<compile_context>
chip_gen: v5e
topology: v5e:2x2
jax: 0.10.0
libtpu: 0.0.40
codegen_flags: <defaults>
</compile_context>

<pallas_src>
import functools

import jax
import jax.numpy as jnp
from jax.experimental import pallas as pl
from jax.experimental.pallas import tpu as pltpu


def _round_up(n, m):
    return ((n + m - 1) // m) * m


def _vmem_capacity_bytes():
    """Physical VMEM of the attached TPU; conservative 64 MiB fallback."""
    try:
        return int(pltpu.get_tpu_info().vmem_capacity_bytes)
    except Exception:
        return 64 << 20  # v7x-sized fallback keeps us safe everywhere


def default_swiglu_tiles():
    """Generation-aware (tm, tn_ff) defaults based on VMEM capacity."""
    cap = _vmem_capacity_bytes()
    if cap >= (100 << 20):      # v5e / v6e (128 MiB VMEM)
        return 512, 512
    return 512, 256             # v7x (64 MiB VMEM): grow tm, shrink tn


def _sublane_multiple(dtype):
    """Native sublane packing for a dtype: 8 f32, 16 bf16, 32 int8/fp8."""
    return max(8, 32 // jnp.dtype(dtype).itemsize)


def swiglu_kernel(x_ref, w1_ref, w3_ref, w2_ref, o_ref, acc_ref):
    # x_ref:   (tm, d_model)   token tile
    # w1_ref:  (d_model, tn)   w1^T block for this ff slice (contiguous)
    # w3_ref:  (d_model, tn)   w3^T block for this ff slice (contiguous)
    # w2_ref:  (tn, d_model)   w2^T block for this ff slice (contiguous)
    # o_ref:   (tm, d_model)   output tile (resident across the ff axis)
    # acc_ref: (tm, d_model)   f32 accumulator scratch
    ff = pl.program_id(1)

    x = x_ref[...]
    # Two (tm, tn) gate projections -> no (tm, 2*tn) temp, no lane slicing.
    h1 = jnp.dot(x, w1_ref[...], preferred_element_type=jnp.float32)
    h3 = jnp.dot(x, w3_ref[...], preferred_element_type=jnp.float32)
    # SiLU(h1) * h3 in f32 (sigmoid goes to the EUP, mul/add to the VPU).
    gated = (h1 * jax.nn.sigmoid(h1)) * h3
    partial = jnp.dot(gated.astype(w2_ref.dtype), w2_ref[...],
                      preferred_element_type=jnp.float32)

    # First ff slice writes the accumulator directly (saves a zero-fill store
    # plus a read of zeros per token tile); later slices accumulate.
    @pl.when(ff == 0)
    def _():
        acc_ref[...] = partial

    @pl.when(ff > 0)
    def _():
        acc_ref[...] += partial

    @pl.when(ff == pl.num_programs(1) - 1)
    def _():
        o_ref[...] = acc_ref[...].astype(o_ref.dtype)


def prepare_swiglu_weights(w1, w2, w3, *, tn_ff=None, dtype=None):
    """One-time (model-load) weight prep.  PyTorch nn.Linear convention:
        w1, w3: (d_ff, d_model);  w2: (d_model, d_ff).
    Returns pre-blocked, per-ff-slice-contiguous operands:
        w1b, w3b: (nblk, d_model, tn)   blocks of w1^T / w3^T
        w2b:      (nblk, tn, d_model)   blocks of w2^T
    Pass dtype=jnp.bfloat16 for production-sized weights.
    """
    d_ff, d_model = w1.shape
    if tn_ff is None:
        tn_ff = default_swiglu_tiles()[1]
    tn = min(tn_ff, d_ff)
    assert d_ff % tn == 0, "d_ff must be divisible by the ff tile"
    assert tn % 128 == 0 or tn == d_ff, "ff tile must be lane-aligned"
    nblk = d_ff // tn

    w1b = jnp.transpose(w1.T.reshape(d_model, nblk, tn), (1, 0, 2))
    w3b = jnp.transpose(w3.T.reshape(d_model, nblk, tn), (1, 0, 2))
    w2b = w2.T.reshape(nblk, tn, d_model)
    if dtype is not None:
        w1b = w1b.astype(dtype)
        w3b = w3b.astype(dtype)
        w2b = w2b.astype(dtype)
    return w1b, w3b, w2b


@functools.partial(jax.jit, static_argnames=("tm", "vmem_limit"))
def _swiglu_pallas(x, w1b, w3b, w2b, *, tm, vmem_limit):
    b, s, d_model = x.shape
    nblk, _, tn = w1b.shape
    d_ff = nblk * tn
    assert w3b.shape == (nblk, d_model, tn)
    assert w2b.shape == (nblk, tn, d_model)

    tokens = b * s
    sub = _sublane_multiple(w1b.dtype)
    # Clamp the token tile for tiny inputs; round to the native sublane tile.
    tm_eff = min(_round_up(tm, sub), _round_up(tokens, sub))
    tokens_p = _round_up(tokens, tm_eff)

    x2d = x.reshape(tokens, d_model).astype(w1b.dtype)
    if tokens_p != tokens:
        # TODO(synk): for very large ragged token counts, handle the tail with
        # a second small call instead of padding the whole activation in HBM.
        x2d = jnp.pad(x2d, ((0, tokens_p - tokens), (0, 0)))

    grid = (tokens_p // tm_eff, nblk)

    out2d = pl.pallas_call(
        swiglu_kernel,
        out_shape=jax.ShapeDtypeStruct((tokens_p, d_model), x.dtype),
        grid_spec=pltpu.PrefetchScalarGridSpec(
            num_scalar_prefetch=0,
            grid=grid,
            in_specs=[
                pl.BlockSpec((tm_eff, d_model), lambda i, j: (i, 0)),      # x
                pl.BlockSpec((None, d_model, tn), lambda i, j: (j, 0, 0)),  # w1^T blk
                pl.BlockSpec((None, d_model, tn), lambda i, j: (j, 0, 0)),  # w3^T blk
                pl.BlockSpec((None, tn, d_model), lambda i, j: (j, 0, 0)),  # w2^T blk
            ],
            out_specs=pl.BlockSpec((tm_eff, d_model), lambda i, j: (i, 0)),
            scratch_shapes=[pltpu.VMEM((tm_eff, d_model), jnp.float32)],
        ),
        compiler_params=pltpu.CompilerParams(
            dimension_semantics=("parallel", "arbitrary"),
            vmem_limit_bytes=vmem_limit,
        ),
    )(x2d, w1b, w3b, w2b)

    return out2d[:tokens].reshape(b, s, d_model)


def swiglu_pallas(x, w1b, w3b, w2b, *, tm=None):
    """x: (batch, seq, d_model). w1b/w3b/w2b from prepare_swiglu_weights."""
    if tm is None:
        tm = default_swiglu_tiles()[0]

    b, s, d_model = x.shape
    nblk, _, tn = w1b.shape
    tokens = b * s
    sub = _sublane_multiple(w1b.dtype)
    tm_eff = min(_round_up(tm, sub), _round_up(tokens, sub))

    w_bytes = jnp.dtype(w1b.dtype).itemsize
    x_bytes = w_bytes  # activations are cast to the weight dtype
    # Declared double-buffered tiles + resident f32 accumulator
    # + in-kernel temporaries (h1, h3, gated in f32, plus the w2-dtype cast).
    est = (
        2 * (tm_eff * d_model * x_bytes            # x tile
             + 2 * d_model * tn * w_bytes          # w1 + w3 tiles
             + tn * d_model * w_bytes              # w2 tile
             + tm_eff * d_model * x_bytes)         # out tile
        + tm_eff * d_model * 4                     # f32 accumulator
        + tm_eff * tn * (3 * 4 + w_bytes)          # h1, h3, gated, cast
    )
    cap = _vmem_capacity_bytes()
    vmem_limit = int(min(cap - (4 << 20), max(est + (8 << 20), 32 << 20)))

    return _swiglu_pallas(x, w1b, w3b, w2b, tm=tm, vmem_limit=vmem_limit)


def swiglu_ref(x, w1, w2, w3):
    hp = jax.lax.Precision.HIGHEST
    h1 = jnp.dot(x, w1.T, precision=hp)
    h3 = jnp.dot(x, w3.T, precision=hp)
    return jnp.dot((h1 * jax.nn.sigmoid(h1)) * h3, w2.T, precision=hp)


if __name__ == "__main__":
    d_model, d_ff = 32, 64
    batch, seq = 2, 8

    key = jax.random.PRNGKey(0)
    kx, k1, k2, k3 = jax.random.split(key, 4)

    # Deterministic "nn.Linear"-style init: U(-1/sqrt(fan_in), 1/sqrt(fan_in)).
    x = jax.random.normal(kx, (batch, seq, d_model), dtype=jnp.float32)
    w1 = jax.random.uniform(k1, (d_ff, d_model), jnp.float32,
                            -1.0 / d_model ** 0.5, 1.0 / d_model ** 0.5)
    w2 = jax.random.uniform(k2, (d_model, d_ff), jnp.float32,
                            -1.0 / d_ff ** 0.5, 1.0 / d_ff ** 0.5)
    w3 = jax.random.uniform(k3, (d_ff, d_model), jnp.float32,
                            -1.0 / d_model ** 0.5, 1.0 / d_model ** 0.5)

    # One-time weight prep (hoisted out of the hot path).  f32 here so the
    # tiny test tracks the f32 reference; use dtype=jnp.bfloat16 in production.
    w1b, w3b, w2b = prepare_swiglu_weights(w1, w2, w3, tn_ff=d_ff)
    w1b, w3b, w2b = jax.block_until_ready((w1b, w3b, w2b))

    out = swiglu_pallas(x, w1b, w3b, w2b)
    out = jax.block_until_ready(out)

    ref = swiglu_ref(x, w1, w2, w3)
    assert out.shape == (batch, seq, d_model)
    assert jnp.allclose(out, ref, atol=1e-3, rtol=1e-3), "mismatch vs reference"

    print("KERNEL_OK")
</pallas_src>

<mosaic_0001>
module attributes {stable_mosaic.version = 11 : i64} {
  func.func @swiglu_kernel(%arg0: i32, %arg1: i32, %arg2: memref<16x32xf32, #tpu.memory_space<vmem>>, %arg3: memref<1x32x64xf32, #tpu.memory_space<vmem>>, %arg4: memref<1x32x64xf32, #tpu.memory_space<vmem>>, %arg5: memref<1x64x32xf32, #tpu.memory_space<vmem>>, %arg6: memref<16x32xf32, #tpu.memory_space<vmem>>, %arg7: memref<16x32xf32, #tpu.memory_space<vmem>>) attributes {dimension_semantics = [#tpu.dimension_semantics<parallel>, #tpu.dimension_semantics<arbitrary>], iteration_bounds = array<i64: 1, 1>, scalar_prefetch = 0 : i64, scratch_operands = 1 : i64, tpu.core_type = #tpu.core_type<tc>, window_params = [{transform_indices = @transform_0, window_bounds = array<i64: 16, 32>}, {transform_indices = @transform_1, window_bounds = array<i64: 1, 32, 64>}, {transform_indices = @transform_2, window_bounds = array<i64: 1, 32, 64>}, {transform_indices = @transform_3, window_bounds = array<i64: 1, 64, 32>}, {transform_indices = @transform_4, window_bounds = array<i64: 16, 32>}]} {
    %c0 = arith.constant 0 : index
    %c0_0 = arith.constant 0 : index
    %0 = vector.load %arg2[%c0, %c0_0] : memref<16x32xf32, #tpu.memory_space<vmem>>, vector<16x32xf32>
    %c0_1 = arith.constant 0 : index
    %c0_2 = arith.constant 0 : index
    %c0_3 = arith.constant 0 : index
    %1 = vector.load %arg3[%c0_1, %c0_2, %c0_3] : memref<1x32x64xf32, #tpu.memory_space<vmem>>, vector<1x32x64xf32>
    %2 = vector.shape_cast %1 : vector<1x32x64xf32> to vector<32x64xf32>
    %cst = arith.constant dense<0.000000e+00> : vector<16x64xf32>
    %3 = tpu.matmul %0, %2, %cst {dimension_numbers = #tpu.dot_dimension_numbers<[1], [0], [0], [1], [0, 0, 1, 1], [], []>} : vector<16x32xf32>, vector<32x64xf32>, vector<16x64xf32> -> vector<16x64xf32>
    %c0_4 = arith.constant 0 : index
    %c0_5 = arith.constant 0 : index
    %c0_6 = arith.constant 0 : index
    %4 = vector.load %arg4[%c0_4, %c0_5, %c0_6] : memref<1x32x64xf32, #tpu.memory_space<vmem>>, vector<1x32x64xf32>
    %5 = vector.shape_cast %4 : vector<1x32x64xf32> to vector<32x64xf32>
    %cst_7 = arith.constant dense<0.000000e+00> : vector<16x64xf32>
    %6 = tpu.matmul %0, %5, %cst_7 {dimension_numbers = #tpu.dot_dimension_numbers<[1], [0], [0], [1], [0, 0, 1, 1], [], []>} : vector<16x32xf32>, vector<32x64xf32>, vector<16x64xf32> -> vector<16x64xf32>
    %7 = arith.negf %3 : vector<16x64xf32>
    %8 = math.exp %7 : vector<16x64xf32>
    %cst_8 = arith.constant 1.000000e+00 : f32
    %9 = vector.broadcast %cst_8 : f32 to vector<16x64xf32>
    %10 = arith.addf %9, %8 : vector<16x64xf32>
    %11 = arith.divf %9, %10 : vector<16x64xf32>
    %12 = arith.mulf %3, %11 : vector<16x64xf32>
    %13 = arith.mulf %12, %6 : vector<16x64xf32>
    %c0_9 = arith.constant 0 : index
    %c0_10 = arith.constant 0 : index
    %c0_11 = arith.constant 0 : index
    %14 = vector.load %arg5[%c0_9, %c0_10, %c0_11] : memref<1x64x32xf32, #tpu.memory_space<vmem>>, vector<1x64x32xf32>
    %15 = vector.shape_cast %14 : vector<1x64x32xf32> to vector<64x32xf32>
    %cst_12 = arith.constant dense<0.000000e+00> : vector<16x32xf32>
    %16 = tpu.matmul %13, %15, %cst_12 {dimension_numbers = #tpu.dot_dimension_numbers<[1], [0], [0], [1], [0, 0, 1, 1], [], []>} : vector<16x64xf32>, vector<64x32xf32>, vector<16x32xf32> -> vector<16x32xf32>
    %c0_i32 = arith.constant 0 : i32
    %17 = arith.cmpi eq, %arg1, %c0_i32 : i32
    %18 = arith.extui %17 : i1 to i32
    %c0_i32_13 = arith.constant 0 : i32
    %19 = arith.cmpi ne, %18, %c0_i32_13 : i32
    scf.if %19 {
      %c0_18 = arith.constant 0 : index
      %c0_19 = arith.constant 0 : index
      %26 = vector.load %arg7[%c0_18, %c0_19] : memref<16x32xf32, #tpu.memory_space<vmem>>, vector<16x32xf32>
      tpu.vector_store %arg7[%c0_18, %c0_19], %16 {strides = array<i32>} : memref<16x32xf32, #tpu.memory_space<vmem>>, vector<16x32xf32>,
    } else {
    }
    %c0_i32_14 = arith.constant 0 : i32
    %20 = arith.cmpi sgt, %arg1, %c0_i32_14 : i32
    %21 = arith.extui %20 : i1 to i32
    %c0_i32_15 = arith.constant 0 : i32
    %22 = arith.cmpi ne, %21, %c0_i32_15 : i32
    scf.if %22 {
      %c0_18 = arith.constant 0 : index
      %c0_19 = arith.constant 0 : index
      %26 = vector.load %arg7[%c0_18, %c0_19] : memref<16x32xf32, #tpu.memory_space<vmem>>, vector<16x32xf32>
      %27 = arith.addf %26, %16 : vector<16x32xf32>
      %c0_20 = arith.constant 0 : index
      %c0_21 = arith.constant 0 : index
      %28 = vector.load %arg7[%c0_20, %c0_21] : memref<16x32xf32, #tpu.memory_space<vmem>>, vector<16x32xf32>
      tpu.vector_store %arg7[%c0_20, %c0_21], %27 {strides = array<i32>} : memref<16x32xf32, #tpu.memory_space<vmem>>, vector<16x32xf32>,
    } else {
    }
    %c0_i32_16 = arith.constant 0 : i32
    %23 = arith.cmpi eq, %arg1, %c0_i32_16 : i32
    %24 = arith.extui %23 : i1 to i32
    %c0_i32_17 = arith.constant 0 : i32
    %25 = arith.cmpi ne, %24, %c0_i32_17 : i32
    scf.if %25 {
      %c0_18 = arith.constant 0 : index
      %c0_19 = arith.constant 0 : index
      %26 = vector.load %arg7[%c0_18, %c0_19] : memref<16x32xf32, #tpu.memory_space<vmem>>, vector<16x32xf32>
      %c0_20 = arith.constant 0 : index
      %c0_21 = arith.constant 0 : index
      %27 = vector.load %arg6[%c0_20, %c0_21] : memref<16x32xf32, #tpu.memory_space<vmem>>, vector<16x32xf32>
      tpu.vector_store %arg6[%c0_20, %c0_21], %26 {strides = array<i32>} : memref<16x32xf32, #tpu.memory_space<vmem>>, vector<16x32xf32>,
    } else {
    }
    return
  }
  func.func @transform_0(%arg0: i32, %arg1: i32) -> (i32, i32) {
    %c0_i32 = arith.constant 0 : i32
    %c0_i32_0 = arith.constant 0 : i32
    return %arg0, %c0_i32 : i32, i32
  }
  func.func @transform_1(%arg0: i32, %arg1: i32) -> (i32, i32, i32) {
    %c0_i32 = arith.constant 0 : i32
    %c0_i32_0 = arith.constant 0 : i32
    %c0_i32_1 = arith.constant 0 : i32
    return %arg1, %c0_i32, %c0_i32_0 : i32, i32, i32
  }
  func.func @transform_2(%arg0: i32, %arg1: i32) -> (i32, i32, i32) {
    %c0_i32 = arith.constant 0 : i32
    %c0_i32_0 = arith.constant 0 : i32
    %c0_i32_1 = arith.constant 0 : i32
    return %arg1, %c0_i32, %c0_i32_0 : i32, i32, i32
  }
  func.func @transform_3(%arg0: i32, %arg1: i32) -> (i32, i32, i32) {
    %c0_i32 = arith.constant 0 : i32
    %c0_i32_0 = arith.constant 0 : i32
    %c0_i32_1 = arith.constant 0 : i32
    return %arg1, %c0_i32, %c0_i32_0 : i32, i32, i32
  }
  func.func @transform_4(%arg0: i32, %arg1: i32) -> (i32, i32) {
    %c0_i32 = arith.constant 0 : i32
    %c0_i32_0 = arith.constant 0 : i32
    return %arg0, %c0_i32 : i32, i32
  }
}

</mosaic_0001>

<bundles_post_ra>
// kernel: _swiglu_pallas.1
= control target key start
LH: loop header
LB: loop body
LE: loop exit
PB: predicated region body
PF: predicated region fallthrough
CT: control target
= control target key end

     0   :  { %s350_s0 = inlined_call_operand.vmem [shape: f32[16,32], index: 0, kind: input, shape index: {}]   ;;  %s351_s1 = inlined_call_operand.vmem [shape: f32[1,32,64], index: 1, kind: input, shape index: {}]   ;;  %s352_s2 = inlined_call_operand.vmem [shape: f32[1,32,64], index: 2, kind: input, shape index: {}]   ;;  %s353_s3 = inlined_call_operand.vmem [shape: f32[1,64,32], index: 3, kind: input, shape index: {}]   ;;  %s354_s4 = inlined_call_operand.hbm [shape: f32[16,32], index: 4, kind: output, shape index: {}]  }
   0x1   :  { %v23_v0 = vld [vmem:[%s351_s1 + $0x18] sm:$0xff]  ;;  %v22_v1 = vld [vmem:[%s351_s1 + $0x10] sm:$0xff]  ;;  %v21_v2 = vld [vmem:[%s351_s1 + $0x8] sm:$0xff] }
   0x2   :  { %43 = vmatpush.msra.mxu0 %v23_v0  ;;  %v57_v3 = vld [vmem:[%s352_s2 + $0x18] sm:$0xff]  ;;  %v56_v4 = vld [vmem:[%s352_s2 + $0x10] sm:$0xff] }
   0x3   :  { %70 = vmatpush.msra.mxu1 %v57_v3 }
   0x4   :  { %44 = vmatpush.msra.mxu0 %v22_v1 }
   0x5   :  { %9 = vsyncpa [#allocation4], 0  ;;  %v20_v5 = vld [vmem:[%s351_s1] sm:$0xff]  ;;  %v55_v6 = vld [vmem:[%s352_s2 + $0x8] sm:$0xff]  ;;  %vm24_vm0 = vcmask 261120   ;;  %71 = vmatpush.msra.mxu1 %v56_v4  ;;  %vm131_vm5 = vcmask 523264  }
   0x6   :  { %45 = vmatpush.msra.mxu0 %v21_v2  ;;  %v18_v7 = vld [vmem:[%s350_s0] sm:$0xff]  ;;  %v19_v9 = vld [vmem:[%s350_s0 + $0x8] sm:$0xff]  ;;  %v130_v10 = vld [vmem:[%s353_s3 + $0x38] sm:$0xff]  ;;  %s190_s25 = sshll.u32 %s354_s4, 4  ;;  %s256_s26 = smov 128   ;;  %s191_s25 = int_to_ptr.hbm [resolvable:$true] %s190_s25 }
   0x7   :  { %v54_v8 = vld [vmem:[%s352_s2] sm:$0xff]  ;;  %72 = vmatpush.msra.mxu1 %v55_v6  ;;  %146 = vmatpush.msra.mxu2 %v130_v10  ;;  %v129_v11 = vld [vmem:[%s353_s3 + $0x30] sm:$0xff]  ;;  %v128_v12 = vld [vmem:[%s353_s3 + $0x28] sm:$0xff]  ;;  %s257_s27 = smov 8  }
   0x8   :  { %46 = vmatpush.msra.mxu0 %v20_v5  ;;  %210 = vmatpush.msra.mxu3 %v130_v10  ;;  %v127_v13 = vld [vmem:[%s353_s3 + $0x20] sm:$0xff]  ;;  %v126_v14 = vld [vmem:[%s353_s3 + $0x18] sm:$0xff]  ;;  %v125_v15 = vld [vmem:[%s353_s3 + $0x10] sm:$0xff] }
   0x9   :  { %202 = vmatmul.msk.f32.vlgmr.msra.gmra.mxu0 %vm24_vm0, %v18_v7  ;;  %73 = vmatpush.msra.mxu1 %v54_v8  ;;  %v124_v16 = vld [vmem:[%s353_s3 + $0x8] sm:$0xff]  ;;  %v123_v17 = vld [vmem:[%s353_s3] sm:$0xff]  ;;  %s255_s3 = smov [#allocation3]  }
   0xa   :  { %204 = vmatmul.msk.f32.vlgmr.msra.gmra.mxu1 %vm24_vm0, %v18_v7  ;;  %147 = vmatpush.msra.mxu2 %v129_v11  ;;  %s188_s22 = sshll.u32 %s255_s3, 4  ;;  %s189_s22 = int_to_ptr.vmem [resolvable:$true] %s188_s22 }
   0xb   :  { %211 = vmatpush.msra.mxu3 %v129_v11 }
   0xc   :  { %148 = vmatpush.msra.mxu2 %v128_v12 }
   0xd   :  { %212 = vmatpush.msra.mxu3 %v128_v12 }
   0xe   :  { %149 = vmatpush.msra.mxu2 %v127_v13 }
   0xf   :  { %213 = vmatpush.msra.mxu3 %v127_v13 }
  0x10   :  { %150 = vmatpush.msra.mxu2 %v126_v14 }
  0x11   :  { %203 = vmatmul.msk.f32.gmra.mxu0 %vm24_vm0, %v19_v9  ;;  %214 = vmatpush.msra.mxu3 %v126_v14 }
  0x12   :  { %205 = vmatmul.msk.f32.gmra.mxu1 %vm24_vm0, %v19_v9  ;;  %151 = vmatpush.msra.mxu2 %v125_v15 }
  0x13   :  { %215 = vmatpush.msra.mxu3 %v125_v15 }
  0x14   :  { %152 = vmatpush.msra.mxu2 %v124_v16 }
  0x15   :  { %216 = vmatpush.msra.mxu3 %v124_v16 }
  0x16   :  { %153 = vmatpush.msra.mxu2 %v123_v17 }
  0x17   :  { %217 = vmatpush.msra.mxu3 %v123_v17 }
  0x86   :  { %v48_v18 = vpop.f32.mrf.mxu0 }
  0x87   :  { %v206_v19 = vmul.f32 -1.442695, %v48_v18  ;;  %v75_v35 = vpop.f32.mrf.mxu1 }
  0x89   :  { %221 = vpow2.f32 %v206_v19 }
  0x8e   :  { %v51_v20 = vpop.f32.mrf.mxu0 }
  0x8f   :  { %v222_v21 = vpop.eup %221  ;;  %v207_v22 = vmul.f32 -1.442695, %v51_v20  ;;  %v78_v49 = vpop.f32.mrf.mxu1 }
  0x90   :  { %v87_v23 = vadd.f32 1.0, %v222_v21 }
  0x91   :  { %223 = vpow2.f32 %v207_v22 }
  0x92   :  { %225 = vrcp.f32 %v87_v23  ;;  %v100_v29 = vand.u32 2147483648, %v87_v23  ;;  %v98_v31 = vand.u32 2147483647, %v87_v23  ;;  %vm94_vm2 = vweird.f32 %v87_v23 }
  0x94   :  { %v101_v34 = vor.u32 1.1754944e-38, %v100_v29  ;;  %vm99_vm4 = vcmp.eq.f32.partialorder %v98_v31, 8.507059e+37 }
  0x97   :  { %v224_v24 = vpop.eup %223 }
  0x98   :  { %v226_v25 = vpop.eup %225  ;;  %v88_v26 = vadd.f32 1.0, %v224_v24 }
  0x99   :  { %v90_v27 = vmul.f32 %v226_v25, %v87_v23  ;;  %vm95_vm1 = vweird.f32 %v226_v25 }
  0x9a   :  { %227 = vrcp.f32 %v88_v26  ;;  %vm96_vm3 = vmor %vm94_vm2, %vm95_vm1  ;;  %v115_v41 = vand.u32 2147483648, %v88_v26  ;;  %v113_v43 = vand.u32 2147483647, %v88_v26  ;;  %vm109_vm7 = vweird.f32 %v88_v26 }
  0x9b   :  { %v91_v28 = vsub.f32 1.0, %v90_v27 }
  0x9c   :  { %v116_v46 = vor.u32 1.1754944e-38, %v115_v41  ;;  %vm114_vm9 = vcmp.eq.f32.partialorder %v113_v43, 8.507059e+37 }
  0x9d   :  { %v92_v30 = vmul.f32 %v226_v25, %v91_v28 }
  0x9f   :  { %v93_v32 = vadd.f32 %v226_v25, %v92_v30 }
  0xa0   :  { %v228_v33 = vpop.eup %227 }
  0xa1   :  { %v97_v36 = vsel %vm96_vm3, %v226_v25, %v93_v32  ;;  %v105_v37 = vmul.f32 %v228_v33, %v88_v26  ;;  %vm110_vm6 = vweird.f32 %v228_v33 }
  0xa2   :  { %v102_v38 = vsel %vm99_vm4, %v101_v34, %v97_v36  ;;  %vm111_vm8 = vmor %vm109_vm7, %vm110_vm6 }
  0xa3   :  { %v119_v39 = vmul.f32 %v102_v38, %v48_v18  ;;  %v106_v40 = vsub.f32 1.0, %v105_v37 }
  0xa5   :  { %v107_v42 = vmul.f32 %v228_v33, %v106_v40  ;;  %v121_v44 = vmul.f32 %v119_v39, %v75_v35 }
  0xa7   :  { %v108_v45 = vadd.f32 %v228_v33, %v107_v42  ;;  %208 = vmatmul.msk.f32.vlgmr.msra.gmra.mxu2 %vm131_vm5, %v121_v44 }
  0xa9   :  { %v112_v47 = vsel %vm111_vm8, %v228_v33, %v108_v45 }
  0xaa   :  { %v117_v48 = vsel %vm114_vm9, %v116_v46, %v112_v47 }
  0xab   :  { %v120_v50 = vmul.f32 %v117_v48, %v51_v20 }
  0xad   :  { %v122_v51 = vmul.f32 %v120_v50, %v78_v49 }
  0xaf   :  { %209 = vmatmul.msk.f32.vlgmr.msra.gmra.mxu3 %vm131_vm5, %v122_v51 }
 0x12a   :  { %v155_v52 = vpop.f32.mrf.mxu2 }
 0x12b   :  { %165 = vst.msk [vmem:[#allocation2] sm:$0xff] %vm24_vm0, %v155_v52 }
 0x132   :  { %v158_v53 = vpop.f32.mrf.mxu3  ;;  %v180_v54 = vld [vmem:[#allocation2] sm:$0xff] }
 0x133   :  { %166 = vst.msk [vmem:[#allocation2 + $0x8] sm:$0xff] %vm24_vm0, %v158_v53 }
 0x134   :  { %182 = vst.msk [vmem:[#allocation3] sm:$0xff] %vm24_vm0, %v180_v54 }
 0x13a   :  { %v181_v55 = vld [vmem:[#allocation2 + $0x8] sm:$0xff] }
 0x13b   :  { %183 = vst.msk [vmem:[#allocation3 + $0x8] sm:$0xff] %vm24_vm0, %v181_v55 }
 0x13c   :  { %196 = dma.vmem_to_hbm [thread:$0]  %s189_s22, 256, %s191_s25, [#allocation4], %s256_s26, %s256_s26, %s257_s27  }
 0x13d   :  { %253 = dma.done.wait [#allocation4], 256  }
 0x13e   :  { %254 = vsyncadd [#allocation4], 4294967040 }
 0x13f   :  { %201 = vsyncpa [#allocation4], 1 }

</bundles_post_ra>
